<compile_context>
chip_gen: v5e
topology: v5e:2x2
jax: 0.10.0
libtpu: 0.0.40
codegen_flags: <defaults>
</compile_context>

<pallas_src>
import math

import jax
import jax.numpy as jnp
from jax.experimental import pallas as pl
from jax.experimental.pallas import tpu as pltpu


# --------------------------------------------------------------------------- #
# Fused forward kernel (one grid step = one full forward instance)
# --------------------------------------------------------------------------- #

def _fused_forward_kernel(
    a_ref,       # [N, N]       GCN-normalized dense adjacency (bf16)
    x_ref,       # [N, H]       node features, zero-padded F->H cols (bf16)
    p_ref,       # [NSG, N]     node -> subgraph mean-pool matrix (bf16)
    asage_ref,   # [NSG, NSG]   block-diag, row-normalized SAGE operator (bf16)
    mask_ref,    # [NSG, 1]     to_dense_batch mask, flattened (f32)
    gmp_ref,     # [B, NSG]     per-graph mean over dense subgraph slots (bf16)
    w_ref,       # [10*H, H]    packed weight slab (bf16)
    b_ref,       # [8, H]       packed bias slab (f32)
    o_ref,       # [B, H]       H-lane-padded log_softmax output (f32)
):
    dot = lambda u, v: jnp.dot(u, v, preferred_element_type=jnp.float32)

    H = w_ref.shape[1]

    # Static, sublane-aligned row slices into the packed weight / bias slabs.
    # Slab order: 0 w_gcn1(row-pad) | 1 w_gcn2 | 2 w1r | 3 w1o | 4 w2r | 5 w2o
    #             | 6 wla | 7 wlb | 8 w_l1 | 9 w_l2(col-pad)
    def w(k):
        return w_ref[k * H:(k + 1) * H, :]

    def b(k):
        return b_ref[k:k + 1, :]

    a = a_ref[...]
    x = x_ref[...]

    # ---- GCN stack over all nodes: relu(A_norm @ (X @ W) + b), twice --------
    h = jnp.maximum(dot(a, dot(x, w(0))) + b(0), 0.0)
    h = jnp.maximum(dot(a, dot(h, w(1))) + b(1), 0.0)

    # ---- global_mean_pool(node -> subgraph); dense batch kept flat ----------
    xd = dot(p_ref[...], h)                      # (NSG, H) f32

    mask = mask_ref[...]                         # (NSG, 1) f32
    asage = asage_ref[...]                       # (NSG, NSG) bf16

    # ---- embed_block1: DenseSAGEConv x2 + Linear on concat ------------------
    # NOTE(v5e micro-opt): the slab stores (w1r;w1o), (w2r;w2o), (wla;wlb) as
    # contiguous (2H, H) blocks, so each dot-pair below could be fused into a
    # single MXU push against w_ref[k*H:(k+2)*H, :] via a lane-concat of the
    # two activations.  Kept as paired dots for lowering robustness; the win is
    # only ~hundreds of cycles (v5e/v6e MRF drain), negligible here.
    agg1 = dot(asage, xd)
    x1 = jnp.maximum((dot(agg1, w(2)) + dot(xd, w(3)) + b(2)) * mask, 0.0)
    agg2 = dot(asage, x1)
    x2 = jnp.maximum((dot(agg2, w(4)) + dot(x1, w(5)) + b(3)) * mask, 0.0)
    # Linear(cat([x1, x2], -1)) == x1 @ W[:H] + x2 @ W[H:]; outer F.relu from
    # NestedDiffPool.forward.
    xe = jnp.maximum(dot(x1, w(6)) + dot(x2, w(7)) + b(4), 0.0)

    # ---- readout: xs[0]=x.mean(dim=1); lin1+relu; dropout(eval)=id; lin2 ----
    xm = dot(gmp_ref[...], xe)                   # (B, H)
    hh = jnp.maximum(dot(xm, w(8)) + b(5), 0.0)
    # w_l2 is zero-padded to H columns; its bias carries -1e30 in cols >= C so
    # the padded lanes contribute exp(.)=0 to the softmax below.
    logits = dot(hh, w(9)) + b(6)                # (B, H)

    z = logits - jnp.max(logits, axis=-1, keepdims=True)
    o_ref[...] = z - jnp.log(jnp.sum(jnp.exp(z), axis=-1, keepdims=True))


# --------------------------------------------------------------------------- #
# Wrapper: batched grid, resident weights, cost estimate
# --------------------------------------------------------------------------- #

def nested_diff_pool_forward(a_all, x_all, p, asage, mask_all, gmp,
                             w_slab, b_slab, *, num_classes):
    G, N, _ = a_all.shape
    H = w_slab.shape[1]
    NSG = p.shape[0]
    B = gmp.shape[0]

    args = (a_all, x_all, p, asage, mask_all, gmp, w_slab, b_slab)
    in_bytes = sum(int(t.size) * t.dtype.itemsize for t in args)

    flops_per_instance = 2 * (
        2 * N * H * H          # two X@W GCN weight matmuls
        + 2 * N * N * H        # two A_norm aggregations
        + NSG * N * H          # node -> subgraph mean pool
        + 2 * NSG * NSG * H    # two SAGE aggregations
        + 6 * NSG * H * H      # lin_rel/lin_root x2 + Block.lin pair
        + B * NSG * H          # per-graph mean readout
        + 2 * B * H * H        # lin1 + (col-padded) lin2
    )
    cost = pl.CostEstimate(
        flops=G * flops_per_instance,
        transcendentals=G * B * (H + 1),          # softmax exp + log
        bytes_accessed=int(in_bytes + G * B * H * 4),
    )

    out_padded = pl.pallas_call(
        _fused_forward_kernel,
        grid=(G,),
        in_specs=[
            # per-instance operands: grid-indexed, double-buffered DMA
            pl.BlockSpec((None, N, N), lambda g: (g, 0, 0)),
            pl.BlockSpec((None, N, H), lambda g: (g, 0, 0)),
            # shared operators / weights: constant index -> DMA'd once, resident
            pl.BlockSpec((NSG, N), lambda g: (0, 0)),
            pl.BlockSpec((NSG, NSG), lambda g: (0, 0)),
            pl.BlockSpec((None, NSG, 1), lambda g: (g, 0, 0)),
            pl.BlockSpec((B, NSG), lambda g: (0, 0)),
            pl.BlockSpec(w_slab.shape, lambda g: (0, 0)),
            pl.BlockSpec(b_slab.shape, lambda g: (0, 0)),
        ],
        out_specs=pl.BlockSpec((None, B, H), lambda g: (g, 0, 0)),
        out_shape=jax.ShapeDtypeStruct((G, B, H), jnp.float32),
        compiler_params=pltpu.CompilerParams(
            dimension_semantics=("parallel",)),   # shards grid across TCs (v7x)
        cost_estimate=cost,
    )(*args)

    return out_padded[:, :, :num_classes]


# --------------------------------------------------------------------------- #
# Pure-JAX reference (single instance; HIGHEST precision, unmerged pairs)
# --------------------------------------------------------------------------- #

def _reference_forward(a, x, p, asage, mask, gmp, w_slab, b_slab):
    H = w_slab.shape[1]
    w = lambda k: w_slab[k * H:(k + 1) * H, :]
    b = lambda k: b_slab[k:k + 1, :]
    hdot = lambda u, v: jnp.dot(u, v, precision=jax.lax.Precision.HIGHEST)

    h = jax.nn.relu(hdot(a, hdot(x, w(0))) + b(0))
    h = jax.nn.relu(hdot(a, hdot(h, w(1))) + b(1))
    xd = hdot(p, h)
    agg1 = hdot(asage, xd)
    x1 = jax.nn.relu((hdot(agg1, w(2)) + hdot(xd, w(3)) + b(2)) * mask)
    agg2 = hdot(asage, x1)
    x2 = jax.nn.relu((hdot(agg2, w(4)) + hdot(x1, w(5)) + b(3)) * mask)
    xe = jax.nn.relu(hdot(x1, w(6)) + hdot(x2, w(7)) + b(4))
    xm = hdot(gmp, xe)
    hh = jax.nn.relu(hdot(xm, w(8)) + b(5))
    logits = hdot(hh, w(9)) + b(6)
    return jax.nn.log_softmax(logits, axis=-1)


# --------------------------------------------------------------------------- #
# Parameter init (deterministic, PyTorch-Linear-style uniform bounds) + packing
# --------------------------------------------------------------------------- #

def linear_params(key, fan_in, fan_out):
    kw, kb = jax.random.split(key)
    bound = 1.0 / math.sqrt(fan_in)
    w = jax.random.uniform(kw, (fan_in, fan_out), jnp.float32, -bound, bound)
    b = jax.random.uniform(kb, (1, fan_out), jnp.float32, -bound, bound)
    return w, b


def block_params(key, c_in, c_hid, c_out):
    ks = jax.random.split(key, 6)
    w1r, b1 = linear_params(ks[0], c_in, c_hid)
    w1o, _ = linear_params(ks[1], c_in, c_hid)            # lin_root (no bias)
    w2r, b2 = linear_params(ks[2], c_hid, c_out)
    w2o, _ = linear_params(ks[3], c_hid, c_out)
    wl, bl = linear_params(ks[4], c_hid + c_out, c_out)   # Linear(hid+out, out)
    return dict(w1r=w1r, w1o=w1o, b1=b1,
                w2r=w2r, w2o=w2o, b2=b2,
                wla=wl[:c_hid, :], wlb=wl[c_hid:, :], bl=bl)


def pack_params(prm, hid, n_cls):
    """Pack all weights into one (10*H, H) slab and all biases into (8, H)."""
    def pad_rows(w):   # (f_in, H) -> (H, H), zero rows f_in..H-1
        return jnp.zeros((hid, hid), jnp.float32).at[:w.shape[0], :].set(w)

    def pad_cols(w):   # (H, C) -> (H, H), zero cols C..H-1
        return jnp.zeros((hid, hid), jnp.float32).at[:, :w.shape[1]].set(w)

    mats = [pad_rows(prm["w_gcn1"]), prm["w_gcn2"],
            prm["w1r"], prm["w1o"], prm["w2r"], prm["w2o"],
            prm["wla"], prm["wlb"], prm["w_l1"], pad_cols(prm["w_l2"])]
    w_slab = jnp.concatenate(mats, axis=0)                     # (10*H, H)

    # b_l2 padded with -1e30 so padded logit lanes vanish from the softmax.
    b_l2_pad = jnp.full((1, hid), -1e30, jnp.float32).at[:, :n_cls].set(prm["b_l2"])
    biases = [prm["b_gcn1"], prm["b_gcn2"], prm["b1"], prm["b2"], prm["bl"],
              prm["b_l1"], b_l2_pad, jnp.zeros((1, hid), jnp.float32)]
    b_slab = jnp.concatenate(biases, axis=0)                   # (8, H)
    return w_slab, b_slab


# --------------------------------------------------------------------------- #
# Main
# --------------------------------------------------------------------------- #

if __name__ == "__main__":
    # ---- synthetic NestedGNN data -------------------------------------------
    G = 4                  # independent forward instances (batched grid axis)
    B = 2                  # graphs per instance
    S = 16                 # subgraphs per graph (= dataset[0].num_subgraphs)
    NSUB = 4               # nodes per rooted subgraph
    NSG = B * S            # total subgraphs = 32
    N = NSG * NSUB         # total nodes = 128
    F = 4                  # dataset.num_features
    HID = 32               # hidden
    C = 4                  # dataset.num_classes

    key = jax.random.PRNGKey(0)
    k_x, k_p = jax.random.split(key)

    node_to_subgraph = jnp.arange(N, dtype=jnp.int32) // NSUB
    subgraph_to_graph = jnp.arange(NSG, dtype=jnp.int32) // S

    # ---- per-instance node features, zero-padded F -> HID columns -----------
    x_feat = jax.random.normal(k_x, (G, N, F), jnp.float32)
    x_all = jnp.zeros((G, N, HID), jnp.float32).at[:, :, :F].set(x_feat)

    # ---- per-instance GCN-normalized dense adjacency over all nodes ---------
    def build_a_norm(extra_chord):
        src, dst = [], []
        for sg in range(NSG):
            off = sg * NSUB
            for i in range(NSUB):
                a_, b_ = off + i, off + (i + 1) % NSUB
                src += [a_, b_]
                dst += [b_, a_]
                if extra_chord:
                    c_ = off + (i + 2) % NSUB
                    src += [a_, c_]
                    dst += [c_, a_]
        ei = jnp.array([src, dst], dtype=jnp.int32)
        A = jnp.zeros((N, N), jnp.float32).at[ei[0], ei[1]].set(1.0)
        A = A + jnp.eye(N, dtype=jnp.float32)                  # self loops
        dinv = jax.lax.rsqrt(jnp.sum(A, axis=1))
        return A * dinv[:, None] * dinv[None, :]

    a_all = jnp.stack([build_a_norm(bool(g % 2)) for g in range(G)])  # (G,N,N)

    # ---- shared structural operators (same subgraph topology per instance) --
    # original graph: ring over the S subgraphs of each graph, both directions
    osrc, odst = [], []
    for g in range(B):
        off = g * S
        for i in range(S):
            a_, b_ = off + i, off + (i + 1) % S
            osrc += [a_, b_]
            odst += [b_, a_]
    original_edge_index = jnp.array([osrc, odst], dtype=jnp.int32)

    # global_mean_pool(node -> subgraph) as a matrix
    onehot = jax.nn.one_hot(node_to_subgraph, NSG, dtype=jnp.float32)   # (N,NSG)
    P = onehot.T / jnp.sum(onehot, axis=0)[:, None]                     # (NSG,N)

    # flat block-diagonal dense adjacency over subgraphs, row-normalized
    # (DenseSAGEConv aggregation with deg clamp folded in)
    adj_bd = jnp.zeros((NSG, NSG), jnp.float32).at[
        original_edge_index[0], original_edge_index[1]].add(1.0)
    deg = jnp.maximum(jnp.sum(adj_bd, axis=-1, keepdims=True), 1.0)
    A_sage = adj_bd / deg

    # to_dense_batch mask, flattened (equal counts -> all valid), per instance
    sg_counts = jnp.sum(jax.nn.one_hot(subgraph_to_graph, B, dtype=jnp.float32), axis=0)
    mask = (jnp.arange(S)[None, :] < sg_counts[:, None]).astype(jnp.float32)
    mask = mask.reshape(NSG, 1)
    mask_all = jnp.tile(mask[None], (G, 1, 1))                          # (G,NSG,1)

    # per-graph mean over the S dense slots.  NOTE: dividing by the fixed S
    # exactly matches torch's x.mean(dim=1) over the zero-padded dense batch
    # (even for unequal subgraph counts); it is NOT a masked "true mean".
    gmp = jax.nn.one_hot(subgraph_to_graph, B, dtype=jnp.float32).T / float(S)

    # ---- parameters ----------------------------------------------------------
    ks = jax.random.split(k_p, 6)
    w_gcn1, b_gcn1 = linear_params(ks[0], F, HID)       # GCNConv(input_dim, hidden)
    w_gcn2, b_gcn2 = linear_params(ks[1], HID, HID)     # convs[0]
    embed_p = block_params(ks[2], HID, HID, HID)        # embed_block1
    # ks[3] would init pool_block1 (dead work in this eval forward; skipped)
    w_l1, b_l1 = linear_params(ks[4], HID, HID)         # lin1
    w_l2, b_l2 = linear_params(ks[5], HID, C)           # lin2

    params = dict(w_gcn1=w_gcn1, b_gcn1=b_gcn1, w_gcn2=w_gcn2, b_gcn2=b_gcn2,
                  w_l1=w_l1, b_l1=b_l1, w_l2=w_l2, b_l2=b_l2, **embed_p)
    w_slab, b_slab = pack_params(params, HID, C)

    # ---- bf16 matmul operands (mask / biases / accumulations stay f32) ------
    bf = lambda t: t.astype(jnp.bfloat16)
    a_bf, x_bf, p_bf = bf(a_all), bf(x_all), bf(P)
    asage_bf, gmp_bf, w_bf = bf(A_sage), bf(gmp), bf(w_slab)

    # ---- fused batched forward (single pallas_call, grid over instances) ----
    out = nested_diff_pool_forward(a_bf, x_bf, p_bf, asage_bf, mask_all,
                                   gmp_bf, w_bf, b_slab, num_classes=C)
    out = jax.block_until_ready(out)

    # ---- checks --------------------------------------------------------------
    # Reference uses the same bf16-rounded operands (promoted to f32) so the
    # comparison isolates kernel correctness from the intentional bf16 storage.
    f32 = lambda t: t.astype(jnp.float32)
    ref = jax.vmap(
        lambda a, x, m: _reference_forward(a, x, f32(p_bf), f32(asage_bf), m,
                                           f32(gmp_bf), f32(w_bf), b_slab)
    )(f32(a_bf), f32(x_bf), mask_all)[:, :, :C]

    assert out.shape == (G, B, C)
    assert jnp.allclose(jnp.sum(jnp.exp(out), axis=-1), 1.0, atol=1e-4)
    assert jnp.allclose(out, ref, atol=5e-3, rtol=5e-3)
    print("KERNEL_OK")
</pallas_src>

<mosaic_0001>
module attributes {stable_mosaic.version = 11 : i64} {
  func.func @_fused_forward_kernel(%arg0: i32, %arg1: memref<1x128x128xbf16, #tpu.memory_space<vmem>>, %arg2: memref<1x128x32xbf16, #tpu.memory_space<vmem>>, %arg3: memref<32x128xbf16, #tpu.memory_space<vmem>>, %arg4: memref<32x32xbf16, #tpu.memory_space<vmem>>, %arg5: memref<1x32x1xf32, #tpu.memory_space<vmem>>, %arg6: memref<2x32xbf16, #tpu.memory_space<vmem>>, %arg7: memref<320x32xbf16, #tpu.memory_space<vmem>>, %arg8: memref<8x32xf32, #tpu.memory_space<vmem>>, %arg9: memref<1x2x32xf32, #tpu.memory_space<vmem>>) attributes {dimension_semantics = [#tpu.dimension_semantics<parallel>], iteration_bounds = array<i64: 4>, scalar_prefetch = 0 : i64, scratch_operands = 0 : i64, tpu.core_type = #tpu.core_type<tc>, window_params = [{transform_indices = @transform_0, window_bounds = array<i64: 1, 128, 128>}, {transform_indices = @transform_1, window_bounds = array<i64: 1, 128, 32>}, {pipeline_mode = #tpu.pipeline_mode<synchronous>, transform_indices = @transform_2, window_bounds = array<i64: 32, 128>}, {pipeline_mode = #tpu.pipeline_mode<synchronous>, transform_indices = @transform_3, window_bounds = array<i64: 32, 32>}, {transform_indices = @transform_4, window_bounds = array<i64: 1, 32, 1>}, {pipeline_mode = #tpu.pipeline_mode<synchronous>, transform_indices = @transform_5, window_bounds = array<i64: 2, 32>}, {pipeline_mode = #tpu.pipeline_mode<synchronous>, transform_indices = @transform_6, window_bounds = array<i64: 320, 32>}, {pipeline_mode = #tpu.pipeline_mode<synchronous>, transform_indices = @transform_7, window_bounds = array<i64: 8, 32>}, {transform_indices = @transform_8, window_bounds = array<i64: 1, 2, 32>}]} {
    %c0 = arith.constant 0 : index
    %c0_0 = arith.constant 0 : index
    %c0_1 = arith.constant 0 : index
    %0 = vector.load %arg1[%c0, %c0_0, %c0_1] : memref<1x128x128xbf16, #tpu.memory_space<vmem>>, vector<1x128x128xbf16>
    %1 = vector.shape_cast %0 : vector<1x128x128xbf16> to vector<128x128xbf16>
    %c0_2 = arith.constant 0 : index
    %c0_3 = arith.constant 0 : index
    %c0_4 = arith.constant 0 : index
    %2 = vector.load %arg2[%c0_2, %c0_3, %c0_4] : memref<1x128x32xbf16, #tpu.memory_space<vmem>>, vector<1x128x32xbf16>
    %3 = vector.shape_cast %2 : vector<1x128x32xbf16> to vector<128x32xbf16>
    %c0_5 = arith.constant 0 : index
    %c0_6 = arith.constant 0 : index
    %4 = vector.load %arg7[%c0_5, %c0_6] : memref<320x32xbf16, #tpu.memory_space<vmem>>, vector<32x32xbf16>
    %cst = arith.constant dense<0.000000e+00> : vector<128x32xf32>
    %5 = tpu.matmul %3, %4, %cst {dimension_numbers = #tpu.dot_dimension_numbers<[1], [0], [0], [1], [0, 0, 1, 1], [], []>} : vector<128x32xbf16>, vector<32x32xbf16>, vector<128x32xf32> -> vector<128x32xf32>
    %cst_7 = arith.constant dense<0.000000e+00> : vector<128x32xf32>
    %6 = tpu.matmul %1, %5, %cst_7 {dimension_numbers = #tpu.dot_dimension_numbers<[1], [0], [0], [1], [0, 0, 1, 1], [], []>} : vector<128x128xbf16>, vector<128x32xf32>, vector<128x32xf32> -> vector<128x32xf32>
    %c0_8 = arith.constant 0 : index
    %c0_9 = arith.constant 0 : index
    %7 = vector.load %arg8[%c0_8, %c0_9] : memref<8x32xf32, #tpu.memory_space<vmem>>, vector<1x32xf32>
    %8 = vector.broadcast %7 : vector<1x32xf32> to vector<128x32xf32>
    %9 = arith.addf %6, %8 : vector<128x32xf32>
    %cst_10 = arith.constant 0.000000e+00 : f32
    %10 = vector.broadcast %cst_10 : f32 to vector<128x32xf32>
    %11 = arith.maximumf %9, %10 : vector<128x32xf32>
    %c32 = arith.constant 32 : index
    %c0_11 = arith.constant 0 : index
    %12 = vector.load %arg7[%c32, %c0_11] : memref<320x32xbf16, #tpu.memory_space<vmem>>, vector<32x32xbf16>
    %cst_12 = arith.constant dense<0.000000e+00> : vector<128x32xf32>
    %13 = tpu.matmul %11, %12, %cst_12 {dimension_numbers = #tpu.dot_dimension_numbers<[1], [0], [0], [1], [0, 0, 1, 1], [], []>} : vector<128x32xf32>, vector<32x32xbf16>, vector<128x32xf32> -> vector<128x32xf32>
    %cst_13 = arith.constant dense<0.000000e+00> : vector<128x32xf32>
    %14 = tpu.matmul %1, %13, %cst_13 {dimension_numbers = #tpu.dot_dimension_numbers<[1], [0], [0], [1], [0, 0, 1, 1], [], []>} : vector<128x128xbf16>, vector<128x32xf32>, vector<128x32xf32> -> vector<128x32xf32>
    %c1 = arith.constant 1 : index
    %c0_14 = arith.constant 0 : index
    %15 = vector.load %arg8[%c1, %c0_14] : memref<8x32xf32, #tpu.memory_space<vmem>>, vector<1x32xf32>
    %16 = vector.broadcast %15 : vector<1x32xf32> to vector<128x32xf32>
    %17 = arith.addf %14, %16 : vector<128x32xf32>
    %cst_15 = arith.constant 0.000000e+00 : f32
    %18 = vector.broadcast %cst_15 : f32 to vector<128x32xf32>
    %19 = arith.maximumf %17, %18 : vector<128x32xf32>
    %c0_16 = arith.constant 0 : index
    %c0_17 = arith.constant 0 : index
    %20 = vector.load %arg3[%c0_16, %c0_17] : memref<32x128xbf16, #tpu.memory_space<vmem>>, vector<32x128xbf16>
    %cst_18 = arith.constant dense<0.000000e+00> : vector<32x32xf32>
    %21 = tpu.matmul %20, %19, %cst_18 {dimension_numbers = #tpu.dot_dimension_numbers<[1], [0], [0], [1], [0, 0, 1, 1], [], []>} : vector<32x128xbf16>, vector<128x32xf32>, vector<32x32xf32> -> vector<32x32xf32>
    %c0_19 = arith.constant 0 : index
    %c0_20 = arith.constant 0 : index
    %c0_21 = arith.constant 0 : index
    %22 = vector.load %arg5[%c0_19, %c0_20, %c0_21] : memref<1x32x1xf32, #tpu.memory_space<vmem>>, vector<1x32x1xf32>
    %23 = vector.shape_cast %22 : vector<1x32x1xf32> to vector<32x1xf32>
    %c0_22 = arith.constant 0 : index
    %c0_23 = arith.constant 0 : index
    %24 = vector.load %arg4[%c0_22, %c0_23] : memref<32x32xbf16, #tpu.memory_space<vmem>>, vector<32x32xbf16>
    %cst_24 = arith.constant dense<0.000000e+00> : vector<32x32xf32>
    %25 = tpu.matmul %24, %21, %cst_24 {dimension_numbers = #tpu.dot_dimension_numbers<[1], [0], [0], [1], [0, 0, 1, 1], [], []>} : vector<32x32xbf16>, vector<32x32xf32>, vector<32x32xf32> -> vector<32x32xf32>
    %c64 = arith.constant 64 : index
    %c0_25 = arith.constant 0 : index
    %26 = vector.load %arg7[%c64, %c0_25] : memref<320x32xbf16, #tpu.memory_space<vmem>>, vector<32x32xbf16>
    %cst_26 = arith.constant dense<0.000000e+00> : vector<32x32xf32>
    %27 = tpu.matmul %25, %26, %cst_26 {dimension_numbers = #tpu.dot_dimension_numbers<[1], [0], [0], [1], [0, 0, 1, 1], [], []>} : vector<32x32xf32>, vector<32x32xbf16>, vector<32x32xf32> -> vector<32x32xf32>
    %c96 = arith.constant 96 : index
    %c0_27 = arith.constant 0 : index
    %28 = vector.load %arg7[%c96, %c0_27] : memref<320x32xbf16, #tpu.memory_space<vmem>>, vector<32x32xbf16>
    %cst_28 = arith.constant dense<0.000000e+00> : vector<32x32xf32>
    %29 = tpu.matmul %21, %28, %cst_28 {dimension_numbers = #tpu.dot_dimension_numbers<[1], [0], [0], [1], [0, 0, 1, 1], [], []>} : vector<32x32xf32>, vector<32x32xbf16>, vector<32x32xf32> -> vector<32x32xf32>
    %30 = arith.addf %27, %29 : vector<32x32xf32>
    %c2 = arith.constant 2 : index
    %c0_29 = arith.constant 0 : index
    %31 = vector.load %arg8[%c2, %c0_29] : memref<8x32xf32, #tpu.memory_space<vmem>>, vector<1x32xf32>
    %32 = vector.broadcast %31 : vector<1x32xf32> to vector<32x32xf32>
    %33 = arith.addf %30, %32 : vector<32x32xf32>
    %34 = vector.broadcast %23 : vector<32x1xf32> to vector<32x32xf32>
    %35 = arith.mulf %33, %34 : vector<32x32xf32>
    %cst_30 = arith.constant 0.000000e+00 : f32
    %36 = vector.broadcast %cst_30 : f32 to vector<32x32xf32>
    %37 = arith.maximumf %35, %36 : vector<32x32xf32>
    %cst_31 = arith.constant dense<0.000000e+00> : vector<32x32xf32>
    %38 = tpu.matmul %24, %37, %cst_31 {dimension_numbers = #tpu.dot_dimension_numbers<[1], [0], [0], [1], [0, 0, 1, 1], [], []>} : vector<32x32xbf16>, vector<32x32xf32>, vector<32x32xf32> -> vector<32x32xf32>
    %c128 = arith.constant 128 : index
    %c0_32 = arith.constant 0 : index
    %39 = vector.load %arg7[%c128, %c0_32] : memref<320x32xbf16, #tpu.memory_space<vmem>>, vector<32x32xbf16>
    %cst_33 = arith.constant dense<0.000000e+00> : vector<32x32xf32>
    %40 = tpu.matmul %38, %39, %cst_33 {dimension_numbers = #tpu.dot_dimension_numbers<[1], [0], [0], [1], [0, 0, 1, 1], [], []>} : vector<32x32xf32>, vector<32x32xbf16>, vector<32x32xf32> -> vector<32x32xf32>
    %c160 = arith.constant 160 : index
    %c0_34 = arith.constant 0 : index
    %41 = vector.load %arg7[%c160, %c0_34] : memref<320x32xbf16, #tpu.memory_space<vmem>>, vector<32x32xbf16>
    %cst_35 = arith.constant dense<0.000000e+00> : vector<32x32xf32>
    %42 = tpu.matmul %37, %41, %cst_35 {dimension_numbers = #tpu.dot_dimension_numbers<[1], [0], [0], [1], [0, 0, 1, 1], [], []>} : vector<32x32xf32>, vector<32x32xbf16>, vector<32x32xf32> -> vector<32x32xf32>
    %43 = arith.addf %40, %42 : vector<32x32xf32>
    %c3 = arith.constant 3 : index
    %c0_36 = arith.constant 0 : index
    %44 = vector.load %arg8[%c3, %c0_36] : memref<8x32xf32, #tpu.memory_space<vmem>>, vector<1x32xf32>
    %45 = vector.broadcast %44 : vector<1x32xf32> to vector<32x32xf32>
    %46 = arith.addf %43, %45 : vector<32x32xf32>
    %47 = vector.broadcast %23 : vector<32x1xf32> to vector<32x32xf32>
    %48 = arith.mulf %46, %47 : vector<32x32xf32>
    %cst_37 = arith.constant 0.000000e+00 : f32
    %49 = vector.broadcast %cst_37 : f32 to vector<32x32xf32>
    %50 = arith.maximumf %48, %49 : vector<32x32xf32>
    %c192 = arith.constant 192 : index
    %c0_38 = arith.constant 0 : index
    %51 = vector.load %arg7[%c192, %c0_38] : memref<320x32xbf16, #tpu.memory_space<vmem>>, vector<32x32xbf16>
    %cst_39 = arith.constant dense<0.000000e+00> : vector<32x32xf32>
    %52 = tpu.matmul %37, %51, %cst_39 {dimension_numbers = #tpu.dot_dimension_numbers<[1], [0], [0], [1], [0, 0, 1, 1], [], []>} : vector<32x32xf32>, vector<32x32xbf16>, vector<32x32xf32> -> vector<32x32xf32>
    %c224 = arith.constant 224 : index
    %c0_40 = arith.constant 0 : index
    %53 = vector.load %arg7[%c224, %c0_40] : memref<320x32xbf16, #tpu.memory_space<vmem>>, vector<32x32xbf16>
    %cst_41 = arith.constant dense<0.000000e+00> : vector<32x32xf32>
    %54 = tpu.matmul %50, %53, %cst_41 {dimension_numbers = #tpu.dot_dimension_numbers<[1], [0], [0], [1], [0, 0, 1, 1], [], []>} : vector<32x32xf32>, vector<32x32xbf16>, vector<32x32xf32> -> vector<32x32xf32>
    %55 = arith.addf %52, %54 : vector<32x32xf32>
    %c4 = arith.constant 4 : index
    %c0_42 = arith.constant 0 : index
    %56 = vector.load %arg8[%c4, %c0_42] : memref<8x32xf32, #tpu.memory_space<vmem>>, vector<1x32xf32>
    %57 = vector.broadcast %56 : vector<1x32xf32> to vector<32x32xf32>
    %58 = arith.addf %55, %57 : vector<32x32xf32>
    %cst_43 = arith.constant 0.000000e+00 : f32
    %59 = vector.broadcast %cst_43 : f32 to vector<32x32xf32>
    %60 = arith.maximumf %58, %59 : vector<32x32xf32>
    %c0_44 = arith.constant 0 : index
    %c0_45 = arith.constant 0 : index
    %61 = vector.load %arg6[%c0_44, %c0_45] : memref<2x32xbf16, #tpu.memory_space<vmem>>, vector<2x32xbf16>
    %cst_46 = arith.constant dense<0.000000e+00> : vector<2x32xf32>
    %62 = tpu.matmul %61, %60, %cst_46 {dimension_numbers = #tpu.dot_dimension_numbers<[1], [0], [0], [1], [0, 0, 1, 1], [], []>} : vector<2x32xbf16>, vector<32x32xf32>, vector<2x32xf32> -> vector<2x32xf32>
    %c256 = arith.constant 256 : index
    %c0_47 = arith.constant 0 : index
    %63 = vector.load %arg7[%c256, %c0_47] : memref<320x32xbf16, #tpu.memory_space<vmem>>, vector<32x32xbf16>
    %cst_48 = arith.constant dense<0.000000e+00> : vector<2x32xf32>
    %64 = tpu.matmul %62, %63, %cst_48 {dimension_numbers = #tpu.dot_dimension_numbers<[1], [0], [0], [1], [0, 0, 1, 1], [], []>} : vector<2x32xf32>, vector<32x32xbf16>, vector<2x32xf32> -> vector<2x32xf32>
    %c5 = arith.constant 5 : index
    %c0_49 = arith.constant 0 : index
    %65 = vector.load %arg8[%c5, %c0_49] : memref<8x32xf32, #tpu.memory_space<vmem>>, vector<1x32xf32>
    %66 = vector.broadcast %65 : vector<1x32xf32> to vector<2x32xf32>
    %67 = arith.addf %64, %66 : vector<2x32xf32>
    %cst_50 = arith.constant 0.000000e+00 : f32
    %68 = vector.broadcast %cst_50 : f32 to vector<2x32xf32>
    %69 = arith.maximumf %67, %68 : vector<2x32xf32>
    %c288 = arith.constant 288 : index
    %c0_51 = arith.constant 0 : index
    %70 = vector.load %arg7[%c288, %c0_51] : memref<320x32xbf16, #tpu.memory_space<vmem>>, vector<32x32xbf16>
    %cst_52 = arith.constant dense<0.000000e+00> : vector<2x32xf32>
    %71 = tpu.matmul %69, %70, %cst_52 {dimension_numbers = #tpu.dot_dimension_numbers<[1], [0], [0], [1], [0, 0, 1, 1], [], []>} : vector<2x32xf32>, vector<32x32xbf16>, vector<2x32xf32> -> vector<2x32xf32>
    %c6 = arith.constant 6 : index
    %c0_53 = arith.constant 0 : index
    %72 = vector.load %arg8[%c6, %c0_53] : memref<8x32xf32, #tpu.memory_space<vmem>>, vector<1x32xf32>
    %73 = vector.broadcast %72 : vector<1x32xf32> to vector<2x32xf32>
    %74 = arith.addf %71, %73 : vector<2x32xf32>
    %cst_54 = arith.constant dense<0xFF800000> : vector<2xf32>
    %75 = vector.multi_reduction <maximumf>, %74, %cst_54 [1] : vector<2x32xf32> to vector<2xf32>
    %76 = vector.shape_cast %75 : vector<2xf32> to vector<2x1xf32>
    %77 = vector.broadcast %76 : vector<2x1xf32> to vector<2x32xf32>
    %78 = arith.subf %74, %77 : vector<2x32xf32>
    %79 = math.exp %78 : vector<2x32xf32>
    %cst_55 = arith.constant dense<0.000000e+00> : vector<2xf32>
    %80 = vector.multi_reduction <add>, %79, %cst_55 [1] : vector<2x32xf32> to vector<2xf32>
    %81 = vector.shape_cast %80 : vector<2xf32> to vector<2x1xf32>
    %82 = math.log %81 : vector<2x1xf32>
    %83 = vector.broadcast %82 : vector<2x1xf32> to vector<2x32xf32>
    %84 = arith.subf %78, %83 : vector<2x32xf32>
    %c0_56 = arith.constant 0 : index
    %c0_57 = arith.constant 0 : index
    %c0_58 = arith.constant 0 : index
    %85 = vector.load %arg9[%c0_56, %c0_57, %c0_58] : memref<1x2x32xf32, #tpu.memory_space<vmem>>, vector<1x2x32xf32>
    %86 = vector.shape_cast %85 : vector<1x2x32xf32> to vector<2x32xf32>
    %87 = vector.shape_cast %84 : vector<2x32xf32> to vector<1x2x32xf32>
    tpu.vector_store %arg9[%c0_56, %c0_57, %c0_58], %87 {strides = array<i32>} : memref<1x2x32xf32, #tpu.memory_space<vmem>>, vector<1x2x32xf32>,
    return
  }
  func.func @transform_0(%arg0: i32) -> (i32, i32, i32) {
    %c0_i32 = arith.constant 0 : i32
    %c0_i32_0 = arith.constant 0 : i32
    %c0_i32_1 = arith.constant 0 : i32
    return %arg0, %c0_i32, %c0_i32_0 : i32, i32, i32
  }
  func.func @transform_1(%arg0: i32) -> (i32, i32, i32) {
    %c0_i32 = arith.constant 0 : i32
    %c0_i32_0 = arith.constant 0 : i32
    %c0_i32_1 = arith.constant 0 : i32
    return %arg0, %c0_i32, %c0_i32_0 : i32, i32, i32
  }
  func.func @transform_2(%arg0: i32) -> (i32, i32) {
    %c0_i32 = arith.constant 0 : i32
    %c0_i32_0 = arith.constant 0 : i32
    %c0_i32_1 = arith.constant 0 : i32
    return %c0_i32, %c0_i32_0 : i32, i32
  }
  func.func @transform_3(%arg0: i32) -> (i32, i32) {
    %c0_i32 = arith.constant 0 : i32
    %c0_i32_0 = arith.constant 0 : i32
    %c0_i32_1 = arith.constant 0 : i32
    return %c0_i32, %c0_i32_0 : i32, i32
  }
  func.func @transform_4(%arg0: i32) -> (i32, i32, i32) {
    %c0_i32 = arith.constant 0 : i32
    %c0_i32_0 = arith.constant 0 : i32
    %c0_i32_1 = arith.constant 0 : i32
    return %arg0, %c0_i32, %c0_i32_0 : i32, i32, i32
  }
  func.func @transform_5(%arg0: i32) -> (i32, i32) {
    %c0_i32 = arith.constant 0 : i32
    %c0_i32_0 = arith.constant 0 : i32
    %c0_i32_1 = arith.constant 0 : i32
    return %c0_i32, %c0_i32_0 : i32, i32
  }
  func.func @transform_6(%arg0: i32) -> (i32, i32) {
    %c0_i32 = arith.constant 0 : i32
    %c0_i32_0 = arith.constant 0 : i32
    %c0_i32_1 = arith.constant 0 : i32
    return %c0_i32, %c0_i32_0 : i32, i32
  }
  func.func @transform_7(%arg0: i32) -> (i32, i32) {
    %c0_i32 = arith.constant 0 : i32
    %c0_i32_0 = arith.constant 0 : i32
    %c0_i32_1 = arith.constant 0 : i32
    return %c0_i32, %c0_i32_0 : i32, i32
  }
  func.func @transform_8(%arg0: i32) -> (i32, i32, i32) {
    %c0_i32 = arith.constant 0 : i32
    %c0_i32_0 = arith.constant 0 : i32
    %c0_i32_1 = arith.constant 0 : i32
    return %arg0, %c0_i32, %c0_i32_0 : i32, i32, i32
  }
}

</mosaic_0001>

<bundles_post_ra>
// kernel: tpu_custom_call.1
= control target key start
LH: loop header
LB: loop body
LE: loop exit
PB: predicated region body
PF: predicated region fallthrough
CT: control target
= control target key end

     0   :  { %13 = vsyncpa [#allocation3], 0  ;;  %s2233_s0 = inlined_call_operand.vmem [shape: bf16[4,128,128], index: 0, kind: input, shape index: {}]   ;;  %s2234_s1 = inlined_call_operand.vmem [shape: bf16[4,128,32], index: 1, kind: input, shape index: {}]   ;;  %s2235_s2 = inlined_call_operand.vmem [shape: bf16[32,128], index: 2, kind: input, shape index: {}]   ;;  %s2236_s3 = inlined_call_operand.vmem [shape: bf16[32,32], index: 3, kind: input, shape index: {}]   ;;  %s2237_s4 = inlined_call_operand.vmem [shape: f32[4,32,1], index: 4, kind: input, shape index: {}]   ;;  %s2238_s5 = inlined_call_operand.vmem [shape: bf16[2,32], index: 5, kind: input, shape index: {}]   ;;  %s2239_s6 = inlined_call_operand.vmem [shape: bf16[320,32], index: 6, kind: input, shape index: {}]   ;;  %s2240_s7 = inlined_call_operand.vmem [shape: f32[8,32], index: 7, kind: input, shape index: {}]   ;;  %s2241_s8 = inlined_call_operand.hbm [shape: f32[4,2,32], index: 8, kind: output, shape index: {}]  }
   0x1   :  { %15 = vsyncpa [#allocation3 + $0x1], 0  ;;  %s1928_s27 = smov 0   ;;  %s1930_s28 = smov 0  }
   0x2   :  { %s1932_s29 = smov 0   ;;  %s1934_s30 = smov 0  }
   0x3 LB: > { %s1949_s9 = sadd.s32 4294967295, %s1880_s30   ;;  %s1492_s10 = sadd.s32 4294967294, %s1880_s30   ;;  %s1880_s30 = sphi %s1934_s30, %s2247_s30   ;;  %s1876_s29 = sphi %s1932_s29, %s2246_s29   ;;  %s1872_s28 = sphi %s1930_s28, %s2245_s28   ;;  %s1868_s27 = sphi %s1928_s27, %s2244_s27  }
   0x4   : > { %s1953_s11 = sadd.s32 1, %s1880_s30   ;;  %s211_s12 = sadd.s32 1, %s1876_s29 }
   0x5   : > { %s208_s13 = ssub.s32 %s1880_s30, %s1953_s11  ;;  %p221_p0 = scmp.ne.s32.totalorder %s1876_s29, %s1872_s28 }
   0x6   : > { %p209_p1 = scmp.eq.s32.totalorder %s208_s13, 0  ;;  %p222_p2 = scmp.eq.s32.totalorder %s1949_s9, 3 }
   0x7   : > { %p227_p3 = scmp.ne.s32.totalorder %s1872_s28, %s1868_s27  ;;  %p228_p4 = scmp.eq.s32.totalorder %s1492_s10, 3 }
   0x8   : > { %s1964_s14 = scalar_select %p209_p1, %s1876_s29, %s211_s12  }
   0x9   : > { %p1966_p5 = por %p222_p2, %p221_p0  ;;  %p1970_p6 = por %p228_p4, %p227_p3 }
   0xa   : > { %p1495_p7 = scmp.ge.s32.totalorder %s1880_s30, 1  ;;  %p285_p8 = scmp.lt.s32.totalorder %s1880_s30, 5 }
   0xc   : > { %p286_p9 = pnand %p1495_p7, %p285_p8 }
   0xd   : > { %p329_p10 = scmp.lt.s32.totalorder (!%p286_p9), %s1949_s9, 3  ;;  %s326_s17 = sand.u32 (!%p286_p9), 1, %s1872_s28  }
   0xe   : > { %289 = sbr.rel (%p286_p9) target bundleno = 2548 (0x9f4), region = 52  ;;  %s1496_s18 = sshll.u32 (!%p286_p9), %s326_s17, 1 }
   0xf   : > { %s328_s23 = scalar_lea.vmem (!%p286_p9), [#allocation2], %s1496_s18  ;;  %s1394_s26 = scalar_lea.sflag (!%p286_p9), [#allocation3], %s326_s17 }
  0x10   : > { %s1406_s24 = sshll.u32 (!%p286_p9), %s328_s23, 4  ;;  %s1838_s18 = scalar_lea.hbm (!%p286_p9), %s2241_s8, 8  ;;  %s1407_s24 = int_to_ptr.vmem [resolvable:$true] %s1406_s24 }
  0x13   : > { %v1742_v0 = vld [vmem:[%s2239_s6 + $0x8] sm:$0xff]  ;;  %v1741_v1 = vld [vmem:[%s2239_s6] sm:$0xff]  ;;  %s1984_s21 = scalar_select %p329_p10, %s1949_s9, 3  ;;  %vm433_vm0 = vcmask 261120   ;;  %v1744_v32 = vld [vmem:[%s2239_s6 + $0x18] sm:$0xff]  ;;  %vm1379_vm1 = vcmask 254976  }
  0x14   : > { %464 = vmatpush.bf16.msra.mxu0 %v1742_v0  ;;  %700 = vmatpush.bf16.msra.mxu2 %v1744_v32  ;;  %v1743_v34 = vld [vmem:[%s2239_s6 + $0x10] sm:$0xff]  ;;  %v1807_v36 = vld [vmem:[%s2240_s7] ss:$0 sm:$0xff] }
  0x15   : > { %s1722_s22 = sshll.u32 %s1984_s21, 6  ;;  %s1724_s13 = sshll.u32 %s1984_s21, 5 }
  0x16   : > { %s338_s25 = scalar_lea.vmem %s2234_s1, %s1722_s22  ;;  %s333_s12 = scalar_lea.vmem %s2233_s0, %s1722_s22 }
  0x17   : > { %v1733_v2 = vld [vmem:[%s338_s25] sm:$0xff]  ;;  %v1734_v3 = vld [vmem:[%s338_s25 + $0x8] sm:$0xff]  ;;  %v1735_v4 = vld [vmem:[%s338_s25 + $0x10] sm:$0xff]  ;;  %s343_s19 = scalar_lea.vmem %s2237_s4, %s1724_s13 }
  0x18   : > { %465 = vmatpush.bf16.msra.mxu0 %v1741_v1  ;;  %v1736_v5 = vld [vmem:[%s338_s25 + $0x18] sm:$0xff]  ;;  %v1737_v6 = vld [vmem:[%s338_s25 + $0x20] sm:$0xff]  ;;  %v1738_v7 = vld [vmem:[%s338_s25 + $0x28] sm:$0xff]  ;;  %701 = vmatpush.bf16.msra.mxu2 %v1743_v34 }
  0x19   : > { %v1739_v8 = vld [vmem:[%s338_s25 + $0x30] sm:$0xff]  ;;  %v1740_v9 = vld [vmem:[%s338_s25 + $0x38] sm:$0xff]  ;;  %v2005_v26 = vld [vmem:[%s333_s12] sm:$0xff] }
  0x1a   : > { %v2008_v27 = vld [vmem:[%s333_s12 + $0x8] sm:$0xff]  ;;  %v2011_v28 = vld [vmem:[%s333_s12 + $0x10] sm:$0xff]  ;;  %v2014_v29 = vld [vmem:[%s333_s12 + $0x18] sm:$0xff] }
  0x1b   : > { %1543 = vmatmul.msk.bf16.vlgmr.msra.gmra.mxu0 %vm433_vm0, %v1733_v2  ;;  %v2017_v30 = vld [vmem:[%s333_s12 + $0x20] sm:$0xff]  ;;  %v2020_v31 = vld [vmem:[%s333_s12 + $0x28] sm:$0xff]  ;;  %v2026_v33 = vld [vmem:[%s333_s12 + $0x30] sm:$0xff] }
  0x1c   : > { %v2032_v35 = vld [vmem:[%s333_s12 + $0x38] sm:$0xff] }
  0x2b   : > { %1544 = vmatmul.msk.bf16.gmra.mxu0 %vm433_vm0, %v1734_v3 }
  0x3b   : > { %1545 = vmatmul.msk.bf16.gmra.mxu0 %vm433_vm0, %v1735_v4 }
  0x4b   : > { %1546 = vmatmul.msk.bf16.gmra.mxu0 %vm433_vm0, %v1736_v5 }
  0x5b   : > { %1547 = vmatmul.msk.bf16.gmra.mxu0 %vm433_vm0, %v1737_v6 }
  0x6b   : > { %1548 = vmatmul.msk.bf16.gmra.mxu0 %vm433_vm0, %v1738_v7 }
  0x7b   : > { %1549 = vmatmul.msk.bf16.gmra.mxu0 %vm433_vm0, %v1739_v8 }
  0x8b   : > { %1550 = vmatmul.msk.bf16.gmra.mxu0 %vm433_vm0, %v1740_v9 }
  0x98   : > { %v467_v10 = vpop.f32.mrf.mxu0 }
  0xa0   : > { %v469_v11 = vpop.f32.mrf.mxu0 }
  0xa8   : > { %v472_v12 = vpop.f32.mrf.mxu0 }
  0xb0   : > { %v474_v13 = vpop.f32.mrf.mxu0 }
  0xb8   : > { %v477_v14 = vpop.f32.mrf.mxu0 }
  0xc0   : > { %v479_v15 = vpop.f32.mrf.mxu0 }
  0xc8   : > { %v482_v16 = vpop.f32.mrf.mxu0 }
  0xd0   : > { %v484_v17 = vpop.f32.mrf.mxu0 }
  0xd8   : > { %v487_v18 = vpop.f32.mrf.mxu0 }
  0xe0   : > { %v489_v19 = vpop.f32.mrf.mxu0 }
  0xe8   : > { %v492_v20 = vpop.f32.mrf.mxu0 }
  0xf0   : > { %v494_v21 = vpop.f32.mrf.mxu0 }
  0xf8   : > { %v497_v22 = vpop.f32.mrf.mxu0 }
 0x100   : > { %v499_v23 = vpop.f32.mrf.mxu0 }
 0x108   : > { %v502_v24 = vpop.f32.mrf.mxu0 }
 0x110   : > { %v504_v25 = vpop.f32.mrf.mxu0 }
 0x111   : > { %557 = vmatpush.msra.mxu1 %v504_v25 }
 0x113   : > { %558 = vmatpush.msra.mxu1 %v502_v24 }
 0x115   : > { %559 = vmatpush.msra.mxu1 %v499_v23 }
 0x117   : > { %560 = vmatpush.msra.mxu1 %v497_v22 }
 0x119   : > { %561 = vmatpush.msra.mxu1 %v494_v21 }
 0x11b   : > { %562 = vmatpush.msra.mxu1 %v492_v20 }
 0x11d   : > { %563 = vmatpush.msra.mxu1 %v489_v19 }
 0x11f   : > { %564 = vmatpush.msra.mxu1 %v487_v18 }
 0x121   : > { %565 = vmatpush.msra.mxu1 %v484_v17 }
 0x123   : > { %566 = vmatpush.msra.mxu1 %v482_v16 }
 0x125   : > { %567 = vmatpush.msra.mxu1 %v479_v15 }
 0x127   : > { %568 = vmatpush.msra.mxu1 %v477_v14 }
 0x129   : > { %569 = vmatpush.msra.mxu1 %v474_v13 }
 0x12b   : > { %570 = vmatpush.msra.mxu1 %v472_v12 }
 0x12d   : > { %571 = vmatpush.msra.mxu1 %v469_v11 }
 0x12f   : > { %572 = vmatpush.msra.mxu1 %v467_v10 }
 0x130   : > { %573 = vmatmul.bf16.vlgmr.msra.gmra.mxu1 %v2005_v26 }
 0x140   : > { %578 = vmatmul.bf16.gmra.mxu1 %v2008_v27 }
 0x150   : > { %583 = vmatmul.bf16.gmra.mxu1 %v2011_v28 }
 0x160   : > { %588 = vmatmul.bf16.gmra.mxu1 %v2014_v29 }
 0x170   : > { %593 = vmatmul.bf16.gmra.mxu1 %v2017_v30 }
 0x180   : > { %598 = vmatmul.bf16.gmra.mxu1 %v2020_v31 }
 0x190   : > { %603 = vmatmul.bf16.gmra.mxu1 %v2026_v33 }
 0x1a0   : > { %608 = vmatmul.bf16.gmra.mxu1 %v2032_v35 }
 0x1ad   : > { %v574_v37 = vpop.f32.mrf.mxu1 }
 0x1ae   : > { %v575_v38 = vadd.f32 %v1807_v36, %v574_v37 }
 0x1b0   : > { %v614_v39 = vmax.f32 %v575_v38, 0.0 }
 0x1b2   : > { %1591 = vmatmul.msk.f32.vlgmr.msra.gmra.mxu2 %vm433_vm0, %v614_v39 }
 0x1b5   : > { %v576_v40 = vpop.f32.mrf.mxu1 }
 0x1b6   : > { %v577_v41 = vadd.f32 %v1807_v36, %v576_v40 }
 0x1b8   : > { %v615_v42 = vmax.f32 %v577_v41, 0.0 }
 0x1ba   : > { %1592 = vmatmul.msk.f32.gmra.mxu2 %vm433_vm0, %v615_v42 }
 0x1bd   : > { %v579_v43 = vpop.f32.mrf.mxu1 }
 0x1be   : > { %v580_v44 = vadd.f32 %v1807_v36, %v579_v43 }
 0x1c0   : > { %v616_v45 = vmax.f32 %v580_v44, 0.0 }
 0x1c2   : > { %1593 = vmatmul.msk.f32.gmra.mxu2 %vm433_vm0, %v616_v45 }
 0x1c5   : > { %v581_v46 = vpop.f32.mrf.mxu1 }
 0x1c6   : > { %v582_v47 = vadd.f32 %v1807_v36, %v581_v46 }
 0x1c8   : > { %v617_v48 = vmax.f32 %v582_v47, 0.0 }
 0x1ca   : > { %1594 = vmatmul.msk.f32.gmra.mxu2 %vm433_vm0, %v617_v48 }
 0x1cd   : > { %v584_v49 = vpop.f32.mrf.mxu1 }
 0x1ce   : > { %v585_v50 = vadd.f32 %v1807_v36, %v584_v49 }
 0x1d0   : > { %v618_v51 = vmax.f32 %v585_v50, 0.0 }
 0x1d2   : > { %1595 = vmatmul.msk.f32.gmra.mxu2 %vm433_vm0, %v618_v51 }
 0x1d5   : > { %v586_v52 = vpop.f32.mrf.mxu1 }
 0x1d6   : > { %v587_v53 = vadd.f32 %v1807_v36, %v586_v52 }
 0x1d8   : > { %v619_v54 = vmax.f32 %v587_v53, 0.0 }
 0x1da   : > { %1596 = vmatmul.msk.f32.gmra.mxu2 %vm433_vm0, %v619_v54 }
 0x1dd   : > { %v589_v55 = vpop.f32.mrf.mxu1 }
 0x1de   : > { %v590_v56 = vadd.f32 %v1807_v36, %v589_v55 }
 0x1e0   : > { %v620_v57 = vmax.f32 %v590_v56, 0.0 }
 0x1e2   : > { %1597 = vmatmul.msk.f32.gmra.mxu2 %vm433_vm0, %v620_v57 }
 0x1e5   : > { %v591_v58 = vpop.f32.mrf.mxu1 }
 0x1e6   : > { %v592_v59 = vadd.f32 %v1807_v36, %v591_v58 }
 0x1e8   : > { %v621_v60 = vmax.f32 %v592_v59, 0.0 }
 0x1ea   : > { %1598 = vmatmul.msk.f32.gmra.mxu2 %vm433_vm0, %v621_v60 }
 0x1ed   : > { %v594_v61 = vpop.f32.mrf.mxu1 }
 0x1ee   : > { %v595_v62 = vadd.f32 %v1807_v36, %v594_v61 }
 0x1f0   : > { %v622_v63 = vmax.f32 %v595_v62, 0.0 }
 0x1f2   : > { %1599 = vmatmul.msk.f32.gmra.mxu2 %vm433_vm0, %v622_v63 }
 0x1f5   : > { %v596_v0 = vpop.f32.mrf.mxu1 }
 0x1f6   : > { %v597_v1 = vadd.f32 %v1807_v36, %v596_v0 }
 0x1f8   : > { %v623_v2 = vmax.f32 %v597_v1, 0.0 }
 0x1fa   : > { %1600 = vmatmul.msk.f32.gmra.mxu2 %vm433_vm0, %v623_v2 }
 0x1fd   : > { %v599_v3 = vpop.f32.mrf.mxu1 }
 0x1fe   : > { %v600_v4 = vadd.f32 %v1807_v36, %v599_v3 }
 0x200   : > { %v624_v5 = vmax.f32 %v600_v4, 0.0 }
 0x202   : > { %1601 = vmatmul.msk.f32.gmra.mxu2 %vm433_vm0, %v624_v5 }
 0x205   : > { %v601_v6 = vpop.f32.mrf.mxu1 }
 0x206   : > { %v602_v7 = vadd.f32 %v1807_v36, %v601_v6 }
 0x208   : > { %v625_v8 = vmax.f32 %v602_v7, 0.0 }
 0x20a   : > { %1602 = vmatmul.msk.f32.gmra.mxu2 %vm433_vm0, %v625_v8 }
 0x20d   : > { %v604_v9 = vpop.f32.mrf.mxu1 }
 0x20e   : > { %v605_v10 = vadd.f32 %v1807_v36, %v604_v9 }
 0x210   : > { %v626_v11 = vmax.f32 %v605_v10, 0.0  ;;  %v1752_v10 = vld [vmem:[%s2239_s6 + $0x38] sm:$0xff] }
 0x211   : > { %958 = vmatpush.bf16.msrb.mxu1 %v1752_v10  ;;  %v1758_v10 = vld [vmem:[%s2239_s6 + $0x68] sm:$0xff] }
 0x212   : > { %1603 = vmatmul.msk.f32.gmra.mxu2 %vm433_vm0, %v626_v11 }
 0x215   : > { %v606_v12 = vpop.f32.mrf.mxu1 }
 0x216   : > { %v607_v13 = vadd.f32 %v1807_v36, %v606_v12 }
 0x218   : > { %v627_v14 = vmax.f32 %v607_v13, 0.0  ;;  %v1751_v13 = vld [vmem:[%s2239_s6 + $0x30] sm:$0xff] }
 0x219   : > { %959 = vmatpush.bf16.msrb.mxu1 %v1751_v13  ;;  %v1753_v13 = vld [vmem:[%s2239_s6 + $0x40] sm:$0xff] }
 0x21a   : > { %1604 = vmatmul.msk.f32.gmra.mxu2 %vm433_vm0, %v627_v14 }
 0x21d   : > { %v609_v15 = vpop.f32.mrf.mxu1 }
 0x21e   : > { %v610_v16 = vadd.f32 %v1807_v36, %v609_v15 }
 0x220   : > { %v628_v17 = vmax.f32 %v610_v16, 0.0 }
 0x222   : > { %1605 = vmatmul.msk.f32.gmra.mxu2 %vm433_vm0, %v628_v17 }
 0x225   : > { %v611_v18 = vpop.f32.mrf.mxu1 }
 0x226   : > { %v612_v19 = vadd.f32 %v1807_v36, %v611_v18 }
 0x228   : > { %v629_v20 = vmax.f32 %v612_v19, 0.0 }
 0x22a   : > { %1606 = vmatmul.msk.f32.gmra.mxu2 %vm433_vm0, %v629_v20 }
 0x235   : > { %v703_v21 = vpop.f32.mrf.mxu2 }
 0x23d   : > { %v706_v22 = vpop.f32.mrf.mxu2 }
 0x245   : > { %v709_v23 = vpop.f32.mrf.mxu2 }
 0x24d   : > { %v712_v24 = vpop.f32.mrf.mxu2 }
 0x255   : > { %v715_v25 = vpop.f32.mrf.mxu2 }
 0x25d   : > { %v718_v32 = vpop.f32.mrf.mxu2 }
 0x265   : > { %v721_v34 = vpop.f32.mrf.mxu2 }
 0x26d   : > { %v724_v37 = vpop.f32.mrf.mxu2 }
 0x275   : > { %v727_v38 = vpop.f32.mrf.mxu2 }
 0x27d   : > { %v730_v39 = vpop.f32.mrf.mxu2 }
 0x285   : > { %v733_v40 = vpop.f32.mrf.mxu2 }
 0x28d   : > { %v736_v41 = vpop.f32.mrf.mxu2 }
 0x295   : > { %v739_v42 = vpop.f32.mrf.mxu2 }
 0x29d   : > { %v742_v43 = vpop.f32.mrf.mxu2 }
 0x2a5   : > { %v745_v44 = vpop.f32.mrf.mxu2 }
 0x2ad   : > { %v748_v45 = vpop.f32.mrf.mxu2 }
 0x2ae   : > { %753 = vmatpush.msra.mxu3 %v748_v45  ;;  %v869_v45 = vld [vmem:[%s343_s19] sm:$0xff] }
 0x2b0   : > { %754 = vmatpush.msra.mxu3 %v745_v44  ;;  %v1882_v44 = vmov 0  }
 0x2b1   : > { %1806 = vset.pattern.permute.xlu1 %v1882_v44  ;;  %1805 = vset.pattern.permute.xlu0 %v1882_v44 }
 0x2b2   : > { %755 = vmatpush.msra.mxu3 %v742_v43  ;;  %v870_v43 = vld [vmem:[%s343_s19 + $0x8] sm:$0xff] }
 0x2b3   : > { %1031 = vperm.xlu1 %1806, %v870_v43  }
 0x2b4   : > { %756 = vmatpush.msra.mxu3 %v739_v42  ;;  %v1749_v42 = vld [vmem:[%s2239_s6 + $0x20] sm:$0xff] }
 0x2b6   : > { %757 = vmatpush.msra.mxu3 %v736_v41  ;;  %v1750_v41 = vld [vmem:[%s2239_s6 + $0x28] sm:$0xff] }
 0x2b8   : > { %758 = vmatpush.msra.mxu3 %v733_v40  ;;  %v2091_v40 = vld [vmem:[%s2236_s3 + $0x8] sm:$0xff] }
 0x2ba   : > { %759 = vmatpush.msra.mxu3 %v730_v39  ;;  %v2084_v39 = vld [vmem:[%s2236_s3] sm:$0xff] }
 0x2bb   : > { %1026 = vperm.xlu1 %1806, %v869_v45  }
 0x2bc   : > { %760 = vmatpush.msra.mxu3 %v727_v38 }
 0x2be   : > { %761 = vmatpush.msra.mxu3 %v724_v37 }
 0x2c0   : > { %762 = vmatpush.msra.mxu3 %v721_v34 }
 0x2c2   : > { %763 = vmatpush.msra.mxu3 %v718_v32 }
 0x2c4   : > { %764 = vmatpush.msra.mxu3 %v715_v25  ;;  %v1746_v25 = vld [vmem:[%s2235_s2 + $0x8] sm:$0xff] }
 0x2c6   : > { %765 = vmatpush.msra.mxu3 %v712_v24 }
 0x2c8   : > { %766 = vmatpush.msra.mxu3 %v709_v23  ;;  %v1745_v23 = vld [vmem:[%s2235_s2] sm:$0xff] }
 0x2ca   : > { %767 = vmatpush.msra.mxu3 %v706_v22 }
 0x2cc   : > { %768 = vmatpush.msra.mxu3 %v703_v21 }
 0x2cd   : > { %769 = vmatmul.bf16.vlgmr.msra.gmra.mxu3 %v2005_v26 }
 0x2ce   : > { %1003 = vmatpush.bf16.msrb.mxu3 %v1750_v41 }
 0x2d2   : > { %1004 = vmatpush.bf16.msrb.mxu3 %v1749_v42 }
 0x2dd   : > { %774 = vmatmul.bf16.gmra.mxu3 %v2008_v27 }
 0x2ed   : > { %779 = vmatmul.bf16.gmra.mxu3 %v2011_v28 }
 0x2fd   : > { %784 = vmatmul.bf16.gmra.mxu3 %v2014_v29 }
 0x30d   : > { %789 = vmatmul.bf16.gmra.mxu3 %v2017_v30 }
 0x31d   : > { %794 = vmatmul.bf16.gmra.mxu3 %v2020_v31  ;;  %v1808_v31 = vld [vmem:[%s2240_s7 + $0x1] ss:$0 sm:$0xff] }
 0x32d   : > { %799 = vmatmul.bf16.gmra.mxu3 %v2026_v33 }
 0x33d   : > { %804 = vmatmul.bf16.gmra.mxu3 %v2032_v35 }
 0x350   : > { %v770_v36 = vpop.f32.mrf.mxu3 }
 0x351   : > { %v771_v20 = vadd.f32 %v1808_v31, %v770_v36  ;;  %v872_v36 = vld [vmem:[%s343_s19 + $0x18] sm:$0xff] }
 0x352   : > { %1041 = vperm.xlu0 %1805, %v872_v36  }
 0x353   : > { %v810_v24 = vmax.f32 %v771_v20, 0.0 }
 0x358   : > { %v772_v46 = vpop.f32.mrf.mxu3 }
 0x359   : > { %v773_v18 = vadd.f32 %v1808_v31, %v772_v46  ;;  %v871_v46 = vld [vmem:[%s343_s19 + $0x10] sm:$0xff]  ;;  %s1719_s19 = sshll.u32 %s1949_s9, 1 }
 0x35a   : > { %1036 = vperm.xlu0 %1805, %v871_v46   ;;  %s1404_s22 = scalar_lea.hbm %s2241_s8, %s1719_s19 }
 0x35b   : > { %v811_v22 = vmax.f32 %v773_v18, 0.0  ;;  %v1760_v18 = vld [vmem:[%s2239_s6 + $0x78] sm:$0xff]  ;;  %s1408_s25 = sshll.u32 %s1404_s22, 4  ;;  %s1409_s25 = int_to_ptr.hbm [resolvable:$true] %s1408_s25 }
 0x35c   : > { %1229 = vmatpush.bf16.msra.mxu3 %v1760_v18  ;;  %s1832_s10 = sshra.s32 %s1409_s25, 4  ;;  %s1833_s10 = int_to_ptr.hbm [resolvable:$true] %s1832_s10 }
 0x35d   : > { %s1834_s12 = scalar_lea.hbm %s1833_s10, 2  ;;  %p1839_p0 = scmp.lt.s32.totalorder %s1833_s10, %s2241_s8 }
 0x35e   : > { %p1835_p11 = scmp.ne.s32.totalorder %s1833_s10, %s1834_s12  ;;  %p1840_p1 = scmp.lt.s32.totalorder %s1838_s18, %s1834_s12 }
 0x360   : > { %v775_v47 = vpop.f32.mrf.mxu3  ;;  %p1836_p12 = pnand %p1835_p11, %p1966_p5  ;;  %p1841_p2 = por %p1840_p1, %p1839_p0 }
 0x361   : > { %v776_v16 = vadd.f32 %v1808_v31, %v775_v47 }
 0x362   : > { %p1837_p13 = pneg %p1836_p12 }
 0x363   : > { %v812_v21 = vmax.f32 %v776_v16, 0.0 }
 0x364   : > { %p1842_p3 = pnand %p1841_p2, %p1837_p13 }
 0x368   : > { %v777_v48 = vpop.f32.mrf.mxu3 }
 0x369   : > { %v778_v14 = vadd.f32 %v1808_v31, %v777_v48 }
 0x36b   : > { %v813_v19 = vmax.f32 %v778_v14, 0.0 }
 0x370   : > { %v780_v49 = vpop.f32.mrf.mxu3 }
 0x371   : > { %v781_v11 = vadd.f32 %v1808_v31, %v780_v49 }
 0x373   : > { %v814_v17 = vmax.f32 %v781_v11, 0.0  ;;  %v1757_v11 = vld [vmem:[%s2239_s6 + $0x60] sm:$0xff] }
 0x378   : > { %v782_v26 = vpop.f32.mrf.mxu3 }
 0x379   : > { %v783_v8 = vadd.f32 %v1808_v31, %v782_v26 }
 0x37b   : > { %v815_v15 = vmax.f32 %v783_v8, 0.0 }
 0x380   : > { %v785_v50 = vpop.f32.mrf.mxu3 }
 0x381   : > { %v786_v6 = vadd.f32 %v1808_v31, %v785_v50  ;;  %v1756_v50 = vld [vmem:[%s2239_s6 + $0x58] sm:$0xff] }
 0x383   : > { %v816_v12 = vmax.f32 %v786_v6, 0.0 }
 0x388   : > { %v787_v27 = vpop.f32.mrf.mxu3 }
 0x389   : > { %v788_v4 = vadd.f32 %v1808_v31, %v787_v27  ;;  %v1755_v27 = vld [vmem:[%s2239_s6 + $0x50] sm:$0xff] }
 0x38b   : > { %v817_v9 = vmax.f32 %v788_v4, 0.0 }
 0x390   : > { %v790_v51 = vpop.f32.mrf.mxu3 }
 0x391   : > { %v791_v2 = vadd.f32 %v1808_v31, %v790_v51  ;;  %v2115_v51 = vpop.permute.xlu1 %1031 }
 0x393   : > { %v818_v7 = vmax.f32 %v791_v2, 0.0 }
 0x398   : > { %v792_v28 = vpop.f32.mrf.mxu3 }
 0x399   : > { %v793_v0 = vadd.f32 %v1808_v31, %v792_v28 }
 0x39b   : > { %v819_v5 = vmax.f32 %v793_v0, 0.0 }
 0x3a0   : > { %v795_v52 = vpop.f32.mrf.mxu3 }
 0x3a1   : > { %v796_v62 = vadd.f32 %v1808_v31, %v795_v52  ;;  %v1809_v52 = vld [vmem:[%s2240_s7 + $0x2] ss:$0 sm:$0xff] }
 0x3a3   : > { %v820_v3 = vmax.f32 %v796_v62, 0.0 }
 0x3a8   : > { %v797_v29 = vpop.f32.mrf.mxu3 }
 0x3a9   : > { %v798_v60 = vadd.f32 %v1808_v31, %v797_v29 }
 0x3ab   : > { %v821_v1 = vmax.f32 %v798_v60, 0.0 }
 0x3b0   : > { %v800_v53 = vpop.f32.mrf.mxu3 }
 0x3b1   : > { %v801_v58 = vadd.f32 %v1808_v31, %v800_v53 }
 0x3b3   : > { %v822_v63 = vmax.f32 %v801_v58, 0.0 }
 0x3b8   : > { %v802_v30 = vpop.f32.mrf.mxu3 }
 0x3b9   : > { %v803_v56 = vadd.f32 %v1808_v31, %v802_v30  ;;  %v2120_v30 = vpop.permute.xlu1 %1026 }
 0x3bb   : > { %v823_v61 = vmax.f32 %v803_v56, 0.0 }
 0x3c0   : > { %v805_v54 = vpop.f32.mrf.mxu3 }
 0x3c1   : > { %v806_v35 = vadd.f32 %v1808_v31, %v805_v54 }
 0x3c3   : > { %v824_v59 = vmax.f32 %v806_v35, 0.0 }
 0x3c4   : > { %v2123_v56 = vpop.permute.xlu0 %1041 }
 0x3c8   : > { %v807_v33 = vpop.f32.mrf.mxu3 }
 0x3c9   : > { %v808_v55 = vadd.f32 %v1808_v31, %v807_v33 }
 0x3cb   : > { %v825_v57 = vmax.f32 %v808_v55, 0.0 }
 0x3cc   : > { %v1037_v0 = vpop.permute.xlu0 %1036 }
 0x3cd   : > { %842 = vmatpush.msrb.mxu0 %v825_v57 }
 0x3cf   : > { %843 = vmatpush.msrb.mxu0 %v824_v59 }
 0x3d1   : > { %844 = vmatpush.msrb.mxu0 %v823_v61 }
 0x3d3   : > { %845 = vmatpush.msrb.mxu0 %v822_v63 }
 0x3d5   : > { %846 = vmatpush.msrb.mxu0 %v821_v1 }
 0x3d7   : > { %847 = vmatpush.msrb.mxu0 %v820_v3 }
 0x3d9   : > { %848 = vmatpush.msrb.mxu0 %v819_v5 }
 0x3db   : > { %849 = vmatpush.msrb.mxu0 %v818_v7 }
 0x3dd   : > { %850 = vmatpush.msrb.mxu0 %v817_v9 }
 0x3df   : > { %851 = vmatpush.msrb.mxu0 %v816_v12  ;;  %v1754_v12 = vld [vmem:[%s2239_s6 + $0x48] sm:$0xff] }
 0x3e0   : > { %1162 = vmatpush.bf16.msra.mxu1 %v1754_v12 }
 0x3e1   : > { %852 = vmatpush.msrb.mxu0 %v815_v15 }
 0x3e3   : > { %853 = vmatpush.msrb.mxu0 %v814_v17 }
 0x3e4   : > { %1163 = vmatpush.bf16.msra.mxu1 %v1753_v13  ;;  %v1813_v13 = vld [vmem:[%s2240_s7 + $0x6] ss:$0 sm:$0xff] }
 0x3e5   : > { %854 = vmatpush.msrb.mxu0 %v813_v19  ;;  %v1759_v19 = vld [vmem:[%s2239_s6 + $0x70] sm:$0xff] }
 0x3e6   : > { %1230 = vmatpush.bf16.msra.mxu3 %v1759_v19 }
 0x3e7   : > { %855 = vmatpush.msrb.mxu0 %v812_v21  ;;  %v1810_v21 = vld [vmem:[%s2240_s7 + $0x3] ss:$0 sm:$0xff] }
 0x3e9   : > { %856 = vmatpush.msrb.mxu0 %v811_v22 }
 0x3eb   : > { %857 = vmatpush.msrb.mxu0 %v810_v24 }
 0x3ec   : > { %858 = vmatmul.bf16.vlgmr.msrb.gmra.mxu0 %v1745_v23 }
 0x3fc   : > { %863 = vmatmul.bf16.gmra.mxu0 %v1746_v25 }
 0x469   : > { %v859_v32 = vpop.f32.mrf.mxu0 }
 0x46a   : > { %1633 = vmatmul.msk.f32.vlgmr.msrb.gmra.mxu1 %vm433_vm0, %v859_v32 }
 0x471   : > { %v861_v34 = vpop.f32.mrf.mxu0 }
 0x472   : > { %1634 = vmatmul.msk.f32.gmra.mxu1 %vm433_vm0, %v861_v34 }
 0x479   : > { %v864_v37 = vpop.f32.mrf.mxu0 }
 0x47a   : > { %1635 = vmatmul.msk.f32.gmra.mxu1 %vm433_vm0, %v864_v37 }
 0x481   : > { %v866_v38 = vpop.f32.mrf.mxu0 }
 0x482   : > { %905 = vmatpush.msrb.mxu2 %v866_v38  ;;  %1636 = vmatmul.msk.f32.gmra.mxu1 %vm433_vm0, %v866_v38 }
 0x484   : > { %906 = vmatpush.msrb.mxu2 %v864_v37 }
 0x486   : > { %907 = vmatpush.msrb.mxu2 %v861_v34 }
 0x488   : > { %908 = vmatpush.msrb.mxu2 %v859_v32 }
 0x489   : > { %1623 = vmatmul.msk.bf16.vlgmr.msrb.gmra.mxu2 %vm433_vm0, %v2084_v39 }
 0x48a   : > { %1117 = vmatpush.bf16.msra.mxu2 %v1756_v50 }
 0x48e   : > { %1118 = vmatpush.bf16.msra.mxu2 %v1755_v27 }
 0x499   : > { %1624 = vmatmul.msk.bf16.gmra.mxu2 %vm433_vm0, %v2091_v40 }
 0x4e7   : > { %v961_v28 = vpop.f32.mrf.mxu1 }
 0x4ef   : > { %v964_v31 = vpop.f32.mrf.mxu1 }
 0x4f7   : > { %v967_v60 = vpop.f32.mrf.mxu1 }
 0x4ff   : > { %v970_v4 = vpop.f32.mrf.mxu1 }
 0x50c   : > { %v910_v47 = vpop.f32.mrf.mxu2 }
 0x50d   : > { %1645 = vmatmul.msk.f32.vlgmr.msrb.gmra.mxu3 %vm433_vm0, %v910_v47 }
 0x514   : > { %v912_v48 = vpop.f32.mrf.mxu2 }
 0x515   : > { %1646 = vmatmul.msk.f32.gmra.mxu3 %vm433_vm0, %v912_v48 }
 0x51c   : > { %v915_v49 = vpop.f32.mrf.mxu2 }
 0x51d   : > { %1647 = vmatmul.msk.f32.gmra.mxu3 %vm433_vm0, %v915_v49 }
 0x524   : > { %v917_v26 = vpop.f32.mrf.mxu2 }
 0x525   : > { %1648 = vmatmul.msk.f32.gmra.mxu3 %vm433_vm0, %v917_v26 }
 0x590   : > { %v1006_v29 = vpop.f32.mrf.mxu3 }
 0x591   : > { %v1007_v53 = vadd.f32 %v1006_v29, %v961_v28 }
 0x593   : > { %v1020_v54 = vadd.f32 %v1809_v52, %v1007_v53 }
 0x595   : > { %v1044_v33 = vmul.f32 %v2120_v30, %v1020_v54 }
 0x597   : > { %v1048_v35 = vmax.f32 %v1044_v33, 0.0 }
 0x598   : > { %v1009_v55 = vpop.f32.mrf.mxu3 }
 0x599   : > { %v1010_v57 = vadd.f32 %v1009_v55, %v964_v31  ;;  %1659 = vmatmul.msk.f32.vlgmr.msra.gmra.mxu2 %vm433_vm0, %v1048_v35 }
 0x59b   : > { %v1021_v58 = vadd.f32 %v1809_v52, %v1010_v57 }
 0x59d   : > { %v1045_v59 = vmul.f32 %v2115_v51, %v1021_v58 }
 0x59f   : > { %v1049_v61 = vmax.f32 %v1045_v59, 0.0 }
 0x5a0   : > { %v1012_v62 = vpop.f32.mrf.mxu3 }
 0x5a1   : > { %v1013_v63 = vadd.f32 %v1012_v62, %v967_v60  ;;  %1660 = vmatmul.msk.f32.gmra.mxu2 %vm433_vm0, %v1049_v61 }
 0x5a3   : > { %v1022_v1 = vadd.f32 %v1809_v52, %v1013_v63 }
 0x5a5   : > { %v1046_v2 = vmul.f32 %v1037_v0, %v1022_v1 }
 0x5a7   : > { %v1050_v3 = vmax.f32 %v1046_v2, 0.0  ;;  %v1287_v2 = vld [vmem:[%s2238_s5] sm:$0x1] }
 0x5a8   : > { %v1015_v5 = vpop.f32.mrf.mxu3 }
 0x5a9   : > { %v1016_v6 = vadd.f32 %v1015_v5, %v970_v4  ;;  %1661 = vmatmul.msk.f32.gmra.mxu2 %vm433_vm0, %v1050_v3  ;;  %v1761_v4 = vld [vmem:[%s2239_s6 + $0x80] sm:$0xff]  ;;  %v1764_v5 = vld [vmem:[%s2239_s6 + $0x98] sm:$0xff] }
 0x5aa   : > { %1373 = vmatpush.bf16.msrb.mxu1 %v1764_v5 }
 0x5ab   : > { %v1023_v7 = vadd.f32 %v1809_v52, %v1016_v6 }
 0x5ad   : > { %v1047_v8 = vmul.f32 %v2123_v56, %v1023_v7 }
 0x5af   : > { %v1051_v9 = vmax.f32 %v1047_v8, 0.0  ;;  %v1763_v8 = vld [vmem:[%s2239_s6 + $0x90] sm:$0xff] }
 0x5b0   : > { %1374 = vmatpush.bf16.msrb.mxu1 %v1763_v8 }
 0x5b1   : > { %1064 = vmatpush.msra.mxu0 %v1051_v9  ;;  %1662 = vmatmul.msk.f32.gmra.mxu2 %vm433_vm0, %v1051_v9 }
 0x5b3   : > { %1065 = vmatpush.msra.mxu0 %v1050_v3 }
 0x5b5   : > { %1066 = vmatpush.msra.mxu0 %v1049_v61 }
 0x5b7   : > { %1067 = vmatpush.msra.mxu0 %v1048_v35 }
 0x5b8   : > { %1649 = vmatmul.msk.bf16.vlgmr.msra.gmra.mxu0 %vm433_vm0, %v2084_v39 }
 0x5b9   : > { %1262 = vmatpush.bf16.msrb.mxu0 %v1758_v10 }
 0x5bd   : > { %1263 = vmatpush.bf16.msrb.mxu0 %v1757_v11 }
 0x5c8   : > { %1650 = vmatmul.msk.bf16.gmra.mxu0 %vm433_vm0, %v2091_v40 }
 0x5d8   : > { %1695 = vmatmul.msk.f32.vlgmr.msrb.gmra.mxu0 %vm433_vm0, %v1048_v35  ;;  %v1811_v35 = vld [vmem:[%s2240_s7 + $0x4] ss:$0 sm:$0xff] }
 0x5e0   : > { %1696 = vmatmul.msk.f32.gmra.mxu0 %vm433_vm0, %v1049_v61 }
 0x5e8   : > { %1697 = vmatmul.msk.f32.gmra.mxu0 %vm433_vm0, %v1050_v3  ;;  %v1762_v3 = vld [vmem:[%s2239_s6 + $0x88] sm:$0xff] }
 0x5f0   : > { %1698 = vmatmul.msk.f32.gmra.mxu0 %vm433_vm0, %v1051_v9  ;;  %v1812_v9 = vld [vmem:[%s2240_s7 + $0x5] ss:$0 sm:$0xff] }
 0x61c   : > { %v1120_v20 = vpop.f32.mrf.mxu2 }
 0x624   : > { %v1123_v25 = vpop.f32.mrf.mxu2 }
 0x62c   : > { %v1126_v41 = vpop.f32.mrf.mxu2 }
 0x634   : > { %v1129_v47 = vpop.f32.mrf.mxu2 }
 0x635   : > { %v1069_v14 = vpop.f32.mrf.mxu0 }
 0x636   : > { %1671 = vmatmul.msk.f32.vlgmr.msra.gmra.mxu1 %vm433_vm0, %v1069_v14 }
 0x63d   : > { %v1071_v15 = vpop.f32.mrf.mxu0 }
 0x63e   : > { %1672 = vmatmul.msk.f32.gmra.mxu1 %vm433_vm0, %v1071_v15 }
 0x645   : > { %v1074_v16 = vpop.f32.mrf.mxu0 }
 0x646   : > { %1673 = vmatmul.msk.f32.gmra.mxu1 %vm433_vm0, %v1074_v16 }
 0x64d   : > { %v1076_v17 = vpop.f32.mrf.mxu0 }
 0x64e   : > { %1674 = vmatmul.msk.f32.gmra.mxu1 %vm433_vm0, %v1076_v17 }
 0x6b3   : > { %v1165_v22 = vpop.f32.mrf.mxu1 }
 0x6b4   : > { %v1166_v23 = vadd.f32 %v1165_v22, %v1120_v20 }
 0x6b6   : > { %v1179_v24 = vadd.f32 %v1810_v21, %v1166_v23 }
 0x6b8   : > { %v1183_v32 = vmul.f32 %v1179_v24, %v2120_v30 }
 0x6ba   : > { %v1187_v34 = vmax.f32 %v1183_v32, 0.0 }
 0x6bb   : > { %v1168_v37 = vpop.f32.mrf.mxu1 }
 0x6bc   : > { %v1169_v38 = vadd.f32 %v1168_v37, %v1123_v25  ;;  %1683 = vmatmul.msk.f32.vlgmr.msra.gmra.mxu3 %vm433_vm0, %v1187_v34 }
 0x6be   : > { %v1180_v39 = vadd.f32 %v1810_v21, %v1169_v38 }
 0x6c0   : > { %v1184_v40 = vmul.f32 %v1180_v39, %v2115_v51  ;;  %v1265_v51 = vpop.f32.mrf.mxu0 }
 0x6c2   : > { %v1188_v42 = vmax.f32 %v1184_v40, 0.0 }
 0x6c3   : > { %v1171_v43 = vpop.f32.mrf.mxu1 }
 0x6c4   : > { %v1172_v44 = vadd.f32 %v1171_v43, %v1126_v41  ;;  %1684 = vmatmul.msk.f32.gmra.mxu3 %vm433_vm0, %v1188_v42 }
 0x6c6   : > { %v1181_v45 = vadd.f32 %v1810_v21, %v1172_v44 }
 0x6c8   : > { %v1185_v36 = vmul.f32 %v1181_v45, %v1037_v0  ;;  %v1268_v52 = vpop.f32.mrf.mxu0 }
 0x6ca   : > { %v1189_v46 = vmax.f32 %v1185_v36, 0.0 }
 0x6cb   : > { %v1174_v48 = vpop.f32.mrf.mxu1 }
 0x6cc   : > { %v1175_v49 = vadd.f32 %v1174_v48, %v1129_v47  ;;  %1685 = vmatmul.msk.f32.gmra.mxu3 %vm433_vm0, %v1189_v46 }
 0x6ce   : > { %v1182_v26 = vadd.f32 %v1810_v21, %v1175_v49 }
 0x6d0   : > { %v1186_v50 = vmul.f32 %v1182_v26, %v2123_v56  ;;  %v1271_v53 = vpop.f32.mrf.mxu0 }
 0x6d2   : > { %v1190_v27 = vmax.f32 %v1186_v50, 0.0 }
 0x6d4   : > { %1686 = vmatmul.msk.f32.gmra.mxu3 %vm433_vm0, %v1190_v27 }
 0x6d8   : > { %v1274_v31 = vpop.f32.mrf.mxu0 }
 0x73f   : > { %v1232_v28 = vpop.f32.mrf.mxu3 }
 0x740   : > { %v1266_v58 = vadd.f32 %v1265_v51, %v1232_v28 }
 0x742   : > { %v1279_v62 = vadd.f32 %v1811_v35, %v1266_v58 }
 0x744   : > { %v1283_v1 = vmax.f32 %v1279_v62, 0.0 }
 0x747   : > { %v1235_v29 = vpop.f32.mrf.mxu3 }
 0x748   : > { %v1269_v55 = vadd.f32 %v1268_v52, %v1235_v29 }
 0x74a   : > { %v1280_v60 = vadd.f32 %v1811_v35, %v1269_v55 }
 0x74c   : > { %v1284_v0 = vmax.f32 %v1280_v60, 0.0 }
 0x74f   : > { %v1238_v30 = vpop.f32.mrf.mxu3 }
 0x750   : > { %v1272_v54 = vadd.f32 %v1271_v53, %v1238_v30 }
 0x752   : > { %v1281_v56 = vadd.f32 %v1811_v35, %v1272_v54 }
 0x754   : > { %v1285_v63 = vmax.f32 %v1281_v56, 0.0 }
 0x757   : > { %v1241_v33 = vpop.f32.mrf.mxu3 }
 0x758   : > { %v1275_v57 = vadd.f32 %v1274_v31, %v1241_v33 }
 0x75a   : > { %v1282_v59 = vadd.f32 %v1811_v35, %v1275_v57 }
 0x75c   : > { %v1286_v61 = vmax.f32 %v1282_v59, 0.0 }
 0x75e   : > { %1303 = vmatpush.msrb.mxu2 %v1286_v61 }
 0x760   : > { %1304 = vmatpush.msrb.mxu2 %v1285_v63 }
 0x762   : > { %1305 = vmatpush.msrb.mxu2 %v1284_v0 }
 0x764   : > { %1306 = vmatpush.msrb.mxu2 %v1283_v1 }
 0x765   : > { %1699 = vmatmul.msk.bf16.vlgmr.msrb.gmra.mxu2 %vm433_vm0, %v1287_v2 }
 0x766   : > { %1339 = vmatpush.bf16.msra.mxu2 %v1762_v3 }
 0x76a   : > { %1340 = vmatpush.bf16.msra.mxu2 %v1761_v4 }
 0x7e8   : > { %v1308_v6 = vpop.f32.mrf.mxu2 }
 0x7e9   : > { %1708 = vmatmul.msk.f32.vlgmr.msra.gmra.mxu2 %vm433_vm0, %v1308_v6 }
 0x7f0   : > { %v1310_v7 = vpop.f32.mrf.mxu2 }
 0x86c   : > { %v1342_v10 = vpop.f32.mrf.mxu2 }
 0x86d   : > { %v1343_v11 = vadd.f32 %v1812_v9, %v1342_v10 }
 0x86f   : > { %v1345_v12 = vmax.f32 %v1343_v11, 0.0 }
 0x871   : > { %1717 = vmatmul.msk.f32.vlgmr.msrb.gmra.mxu1 %vm433_vm0, %v1345_v12 }
 0x8ee   : > { %v1376_v14 = vpop.f32.mrf.mxu1 }
 0x8ef   : > { %v1377_v15 = vadd.f32 %v1813_v13, %v1376_v14 }
 0x8f1   : > { %v1380_v16 = vsel %vm1379_vm1, %v1377_v15, -inf }
 0x8f2   : > { %1381 = vmax.xlane.f32.xlu2 %v1380_v16 }
 0x965   : > { %v1382_v17 = vpop.xlane.xlu2 %1381 }
 0x966   : > { %v1383_v18 = vsub.f32 %v1377_v15, %v1382_v17 }
 0x968   : > { %v1384_v19 = vmul.f32 1.442695, %v1383_v18 }
 0x96a   : > { %1814 = vpow2.f32 %v1384_v19 }
 0x970   : > { %v1815_v20 = vpop.eup %1814 }
 0x971   : > { %v1386_v21 = vsel %vm1379_vm1, %v1815_v20, 0.0 }
 0x972   : > { %1387 = vadd.xlane.f32.xlu2 %v1386_v21 }
 0x9e5   : > { %v1388_v22 = vpop.xlane.xlu2 %1387 }
 0x9e6   : > { %1816 = vlog2.f32 %v1388_v22 }
 0x9ec   : > { %v1817_v23 = vpop.eup %1816 }
 0x9ed   : > { %v1390_v24 = vmul.f32 0.6931472, %v1817_v23 }
 0x9ef   : > { %v1391_v25 = vsub.f32 %v1383_v18, %v1390_v24 }
 0x9f1   : > { %1392 = vst.msk [vmem:[%s328_s23] sm:$0x3] %vm1379_vm1, %v1391_v25 }
 0x9f2   : > { %1845 = shalt.err (!%p1842_p3)
}
 0x9f3   : > { %1765 = dma.vmem_to_hbm [thread:$0]  (%p1966_p5), %s1407_s24, 32, %s1409_s25, %s1394_s26  }
 0x9f4 PF: > { %p1771_p4 = scmp.ge.s32.totalorder %s1880_s30, 2  ;;  %s1420_s17 = sand.u32 1, %s1868_s27  }
 0x9f5   : > { %s1421_s20 = scalar_lea.sflag [#allocation3], %s1420_s17 }
 0x9f6   : > { %p1768_p7 = pnand %p1771_p4, %p1970_p6 }
 0x9f8   : > { %p1769_p8 = pneg %p1768_p7 }
 0x9fa   : > { %1863 = dma.done.wait (%p1769_p8), %s1421_s20, 32  }
 0x9fb   : > { %1865 = vsyncadd (%p1769_p8), %s1421_s20, 4294967264  ;;  %p18_p9 = scmp.ge.s32.totalorder %s1953_s11, 6   ;;  %s2244_s27 = smov %s1872_s28 }
 0x9fc   : > { %s2245_s28 = smov %s1876_s29  ;;  %s2246_s29 = smov %s1964_s14 }
 0x9fd   : > { %s2247_s30 = smov %s1953_s11  ;;  %20 = sbr.rel (!%p18_p9) target bundleno = 3 (0x3), region = 93 }
 0xa02   :  { %1427 = vsyncpa [#allocation3], 1 }
 0xa03   :  { %1429 = vsyncpa [#allocation3 + $0x1], 1 }

</bundles_post_ra>
